<compile_context>
chip_gen: v7x
topology: tpu7x:2x2x1
jax: 0.10.0
libtpu: 0.0.40
codegen_flags: <defaults>
</compile_context>

<pallas_src>
import functools

import jax
import jax.numpy as jnp
from jax.experimental import pallas as pl
from jax.experimental.pallas import tpu as pltpu


def _round_up(n, m):
    return ((n + m - 1) // m) * m


def _choose_tb(batch):
    """Batch tile: full batch if small; else a multiple-of-8 divisor capped at B//2 so the
    'parallel' grid axis has >= 2 steps (keeps both v7x TensorCores busy)."""
    if batch <= 8:
        return batch
    cap = max(8, batch // 2)
    for tb in (256, 128, 64, 32, 16, 8):
        if tb <= cap and batch % tb == 0:
            return tb
    return batch  # odd batch sizes: whole batch per tile (block == full extent is legal)


def _choose_ts(s, tb, c, itemsize, budget_bytes):
    """Spatial (lane) tile: full extent if it fits the budget, otherwise a budget-maximal
    multiple of 128 (the grid uses cdiv and the kernel masks the tail lanes)."""
    if tb * c * s * itemsize <= budget_bytes:
        return s
    units = max(1, budget_bytes // (tb * c * 128 * itemsize))
    units = min(units, pl.cdiv(s, 128))
    return units * 128


def _head_kernel(x_ref, w_ref, b_ref, o_ref, acc_ref, *,
                 inv_s, s_total, ts, mask_tail, precision):
    # x_ref: [TB, C, TS] (native dtype)    w_ref: [C, N_pad] (native dtype)
    # b_ref: [1, N_pad]                    o_ref: [TB, N_pad]
    # acc_ref: [TB, C] f32 scratch (persists across the spatial grid axis)
    s = pl.program_id(1)

    @pl.when(s == 0)
    def _():
        acc_ref[...] = jnp.zeros_like(acc_ref)

    # Partial global-average-pool: accumulate spatial sums in f32.
    x = x_ref[...].astype(jnp.float32)              # cast after VMEM load (v5e has no bf16 VPU)
    if mask_tail:
        # Last spatial block may extend past the true H*W; zero the out-of-range lanes
        # instead of padding the activation in HBM (cheap VPU select).
        col = jax.lax.broadcasted_iota(jnp.int32, (1, 1, ts), 2) + s * ts
        x = jnp.where(col < s_total, x, 0.0)
    acc_ref[...] += jnp.sum(x, axis=-1)             # [TB, C]

    @pl.when(s == pl.num_programs(1) - 1)
    def _():
        pooled = acc_ref[...] * inv_s               # mean over the true H*W
        w = w_ref[...]
        logits = jnp.dot(pooled.astype(w.dtype), w,
                         preferred_element_type=jnp.float32,
                         precision=precision)
        o_ref[...] = (logits + b_ref[...].astype(jnp.float32)).astype(o_ref.dtype)


def classification_head_forward(x_nchw, weight, bias):
    """x_nchw: [B, C, H, W]; weight: [num_classes, C]; bias: [num_classes] -> [B, num_classes]."""
    B, C, H, W = x_nchw.shape
    num_classes = weight.shape[0]
    S = H * W

    x3 = x_nchw.reshape(B, C, S)                    # metadata-only reshape; stream native dtype
    x_itemsize = jnp.dtype(x3.dtype).itemsize
    out_dtype = x_nchw.dtype

    TB = _choose_tb(B)

    # ~8 MiB x tiles (double-buffered -> ~16 MiB), amortizes per-grid-step overhead at
    # v7x's ~3.2 TB/s while staying well inside the 48 MiB VMEM limit below.
    budget = 8 * 1024 * 1024
    TS = _choose_ts(S, TB, C, x_itemsize, budget)
    mask_tail = (S % TS) != 0

    # Lane-dense params / output: pad num_classes up to a multiple of 128.
    # Keep weight/bias in their NATIVE dtype (no f32 upcast -> half the HBM/VMEM for bf16 heads).
    n_pad = _round_up(num_classes, 128)
    w_p = jnp.zeros((C, n_pad), weight.dtype).at[:, :num_classes].set(weight.T)
    b_p = jnp.zeros((1, n_pad), bias.dtype).at[:, :num_classes].set(bias.reshape(1, -1))

    # Exact f32 matmul when params are f32 (bit parity with the reference); bf16 params go
    # straight to the MXU at full rate with f32 accumulation.
    if jnp.dtype(weight.dtype) == jnp.float32:
        precision = jax.lax.Precision.HIGHEST
    else:
        precision = jax.lax.Precision.DEFAULT

    grid = (B // TB, pl.cdiv(S, TS))

    cost = pl.CostEstimate(
        flops=2 * B * C * num_classes + B * C * S,
        transcendentals=0,
        bytes_accessed=(B * C * S * x_itemsize
                        + C * n_pad * jnp.dtype(weight.dtype).itemsize
                        + B * n_pad * jnp.dtype(out_dtype).itemsize),
    )

    kernel = functools.partial(
        _head_kernel,
        inv_s=1.0 / float(S), s_total=S, ts=TS,
        mask_tail=mask_tail, precision=precision,
    )

    def _build(single_buffer_params):
        if single_buffer_params:
            # W / bias have constant index maps -> no need to double-buffer them.
            w_spec = pl.BlockSpec((C, n_pad), lambda b, s: (0, 0),
                                  pipeline_mode=pl.Buffered(1))
            b_spec = pl.BlockSpec((1, n_pad), lambda b, s: (0, 0),
                                  pipeline_mode=pl.Buffered(1))
        else:
            w_spec = pl.BlockSpec((C, n_pad), lambda b, s: (0, 0))
            b_spec = pl.BlockSpec((1, n_pad), lambda b, s: (0, 0))
        return pl.pallas_call(
            kernel,
            out_shape=jax.ShapeDtypeStruct((B, n_pad), out_dtype),
            grid_spec=pltpu.PrefetchScalarGridSpec(
                num_scalar_prefetch=0,
                grid=grid,
                in_specs=[
                    pl.BlockSpec((TB, C, TS), lambda b, s: (b, 0, s)),   # x tile
                    w_spec,                                              # W^T (resident)
                    b_spec,                                              # bias (resident)
                ],
                out_specs=pl.BlockSpec((TB, n_pad), lambda b, s: (b, 0)),
                scratch_shapes=[pltpu.VMEM((TB, C), jnp.float32)],
            ),
            compiler_params=pltpu.CompilerParams(
                dimension_semantics=("parallel", "arbitrary"),
                vmem_limit_bytes=48 * 1024 * 1024,
            ),
            cost_estimate=cost,
        )

    try:
        out_padded = _build(True)(x3, w_p, b_p)
    except Exception:
        # Fallback if this JAX build rejects pipeline_mode=pl.Buffered(1); only costs the
        # (small) extra VMEM of double-buffered resident params.
        out_padded = _build(False)(x3, w_p, b_p)

    return out_padded[:, :num_classes]


if __name__ == "__main__":
    # Small shapes consistent with the module's forward: NCHW input, in_ch = C.
    B, C, H, W = 2, 4, 16, 16
    num_classes = 8

    key = jax.random.PRNGKey(0)
    kx, kw, kb = jax.random.split(key, 3)

    x = jax.random.normal(kx, (B, C, H, W), dtype=jnp.float32)
    # Deterministic synthetic params (shapes per nn.Linear(in_ch, num_classes)).
    weight = jax.random.normal(kw, (num_classes, C), dtype=jnp.float32) * 0.1
    bias = jax.random.normal(kb, (num_classes,), dtype=jnp.float32) * 0.1

    out = classification_head_forward(x, weight, bias)
    out = jax.block_until_ready(out)

    # Reference check in plain JAX (same math as the torch module).
    pooled_ref = jnp.mean(x, axis=(2, 3))          # [B, C]
    ref = pooled_ref @ weight.T + bias             # [B, num_classes]
    assert out.shape == (B, num_classes)
    assert jnp.allclose(out, ref, atol=1e-5, rtol=1e-5)

    print("KERNEL_OK")
</pallas_src>

<mosaic_0001>
module attributes {stable_mosaic.version = 11 : i64} {
  func.func @_head_kernel(%arg0: i32, %arg1: i32, %arg2: memref<2x4x256xf32, #tpu.memory_space<vmem>>, %arg3: memref<4x128xf32, #tpu.memory_space<vmem>>, %arg4: memref<1x128xf32, #tpu.memory_space<vmem>>, %arg5: memref<2x128xf32, #tpu.memory_space<vmem>>, %arg6: memref<2x4xf32, #tpu.memory_space<vmem>>) attributes {dimension_semantics = [#tpu.dimension_semantics<parallel>, #tpu.dimension_semantics<arbitrary>], iteration_bounds = array<i64: 1, 1>, scalar_prefetch = 0 : i64, scratch_operands = 1 : i64, tpu.core_type = #tpu.core_type<tc>, window_params = [{transform_indices = @transform_0, window_bounds = array<i64: 2, 4, 256>}, {pipeline_mode = #tpu.pipeline_mode<synchronous>, transform_indices = @transform_1, window_bounds = array<i64: 4, 128>}, {pipeline_mode = #tpu.pipeline_mode<synchronous>, transform_indices = @transform_2, window_bounds = array<i64: 1, 128>}, {transform_indices = @transform_3, window_bounds = array<i64: 2, 128>}]} {
    %c0_i32 = arith.constant 0 : i32
    %0 = arith.cmpi eq, %arg1, %c0_i32 : i32
    %1 = arith.extui %0 : i1 to i32
    %c0_i32_0 = arith.constant 0 : i32
    %2 = arith.cmpi ne, %1, %c0_i32_0 : i32
    scf.if %2 {
      %cst_9 = arith.constant 0.000000e+00 : f32
      %11 = vector.broadcast %cst_9 : f32 to vector<2x4xf32>
      %c0_10 = arith.constant 0 : index
      %c0_11 = arith.constant 0 : index
      %12 = vector.load %arg6[%c0_10, %c0_11] : memref<2x4xf32, #tpu.memory_space<vmem>>, vector<2x4xf32>
      tpu.vector_store %arg6[%c0_10, %c0_11], %11 {strides = array<i32>} : memref<2x4xf32, #tpu.memory_space<vmem>>, vector<2x4xf32>,
    } else {
    }
    %c0 = arith.constant 0 : index
    %c0_1 = arith.constant 0 : index
    %c0_2 = arith.constant 0 : index
    %3 = vector.load %arg2[%c0, %c0_1, %c0_2] : memref<2x4x256xf32, #tpu.memory_space<vmem>>, vector<2x4x256xf32>
    %c0_3 = arith.constant 0 : index
    %c0_4 = arith.constant 0 : index
    %4 = vector.load %arg6[%c0_3, %c0_4] : memref<2x4xf32, #tpu.memory_space<vmem>>, vector<2x4xf32>
    %cst = arith.constant dense<0.000000e+00> : vector<2x4xf32>
    %5 = vector.multi_reduction <add>, %3, %cst [2] : vector<2x4x256xf32> to vector<2x4xf32>
    %6 = arith.addf %4, %5 : vector<2x4xf32>
    %c0_5 = arith.constant 0 : index
    %c0_6 = arith.constant 0 : index
    %7 = vector.load %arg6[%c0_5, %c0_6] : memref<2x4xf32, #tpu.memory_space<vmem>>, vector<2x4xf32>
    tpu.vector_store %arg6[%c0_5, %c0_6], %6 {strides = array<i32>} : memref<2x4xf32, #tpu.memory_space<vmem>>, vector<2x4xf32>,
    %c0_i32_7 = arith.constant 0 : i32
    %8 = arith.cmpi eq, %arg1, %c0_i32_7 : i32
    %9 = arith.extui %8 : i1 to i32
    %c0_i32_8 = arith.constant 0 : i32
    %10 = arith.cmpi ne, %9, %c0_i32_8 : i32
    scf.if %10 {
      %c0_9 = arith.constant 0 : index
      %c0_10 = arith.constant 0 : index
      %11 = vector.load %arg6[%c0_9, %c0_10] : memref<2x4xf32, #tpu.memory_space<vmem>>, vector<2x4xf32>
      %cst_11 = arith.constant 3.906250e-03 : f32
      %12 = vector.broadcast %cst_11 : f32 to vector<2x4xf32>
      %13 = arith.mulf %11, %12 : vector<2x4xf32>
      %c0_12 = arith.constant 0 : index
      %c0_13 = arith.constant 0 : index
      %14 = vector.load %arg3[%c0_12, %c0_13] : memref<4x128xf32, #tpu.memory_space<vmem>>, vector<4x128xf32>
      %cst_14 = arith.constant dense<0.000000e+00> : vector<2x128xf32>
      %15 = tpu.matmul %13, %14, %cst_14 {dimension_numbers = #tpu.dot_dimension_numbers<[1], [0], [0], [1], [0, 0, 1, 1], [], []>, precision = #tpu.contract_precision<fp32>} : vector<2x4xf32>, vector<4x128xf32>, vector<2x128xf32> -> vector<2x128xf32>
      %c0_15 = arith.constant 0 : index
      %c0_16 = arith.constant 0 : index
      %16 = vector.load %arg4[%c0_15, %c0_16] : memref<1x128xf32, #tpu.memory_space<vmem>>, vector<1x128xf32>
      %17 = vector.broadcast %16 : vector<1x128xf32> to vector<2x128xf32>
      %18 = arith.addf %15, %17 : vector<2x128xf32>
      %c0_17 = arith.constant 0 : index
      %c0_18 = arith.constant 0 : index
      %19 = vector.load %arg5[%c0_17, %c0_18] : memref<2x128xf32, #tpu.memory_space<vmem>>, vector<2x128xf32>
      tpu.vector_store %arg5[%c0_17, %c0_18], %18 {strides = array<i32>} : memref<2x128xf32, #tpu.memory_space<vmem>>, vector<2x128xf32>,
    } else {
    }
    return
  }
  func.func @transform_0(%arg0: i32, %arg1: i32) -> (i32, i32, i32) {
    %c0_i32 = arith.constant 0 : i32
    %c0_i32_0 = arith.constant 0 : i32
    return %arg0, %c0_i32, %arg1 : i32, i32, i32
  }
  func.func @transform_1(%arg0: i32, %arg1: i32) -> (i32, i32) {
    %c0_i32 = arith.constant 0 : i32
    %c0_i32_0 = arith.constant 0 : i32
    %c0_i32_1 = arith.constant 0 : i32
    return %c0_i32, %c0_i32_0 : i32, i32
  }
  func.func @transform_2(%arg0: i32, %arg1: i32) -> (i32, i32) {
    %c0_i32 = arith.constant 0 : i32
    %c0_i32_0 = arith.constant 0 : i32
    %c0_i32_1 = arith.constant 0 : i32
    return %c0_i32, %c0_i32_0 : i32, i32
  }
  func.func @transform_3(%arg0: i32, %arg1: i32) -> (i32, i32) {
    %c0_i32 = arith.constant 0 : i32
    %c0_i32_0 = arith.constant 0 : i32
    return %arg0, %c0_i32 : i32, i32
  }
}

module attributes {stable_mosaic.version = 11 : i64} {
  func.func @_head_kernel(%arg0: i32, %arg1: i32, %arg2: memref<2x4x256xf32, #tpu.memory_space<vmem>>, %arg3: memref<4x128xf32, #tpu.memory_space<vmem>>, %arg4: memref<1x128xf32, #tpu.memory_space<vmem>>, %arg5: memref<2x128xf32, #tpu.memory_space<vmem>>, %arg6: memref<2x4xf32, #tpu.memory_space<vmem>>) attributes {dimension_semantics = [#tpu.dimension_semantics<parallel>, #tpu.dimension_semantics<arbitrary>], iteration_bounds = array<i64: 1, 1>, scalar_prefetch = 0 : i64, scratch_operands = 1 : i64, tpu.core_type = #tpu.core_type<tc>, window_params = [{transform_indices = @transform_0, window_bounds = array<i64: 2, 4, 256>}, {pipeline_mode = #tpu.pipeline_mode<synchronous>, transform_indices = @transform_1, window_bounds = array<i64: 4, 128>}, {pipeline_mode = #tpu.pipeline_mode<synchronous>, transform_indices = @transform_2, window_bounds = array<i64: 1, 128>}, {transform_indices = @transform_3, window_bounds = array<i64: 2, 128>}]} {
    %c0_i32 = arith.constant 0 : i32
    %0 = arith.cmpi eq, %arg1, %c0_i32 : i32
    %1 = arith.extui %0 : i1 to i32
    %c0_i32_0 = arith.constant 0 : i32
    %2 = arith.cmpi ne, %1, %c0_i32_0 : i32
    scf.if %2 {
      %cst_9 = arith.constant 0.000000e+00 : f32
      %11 = vector.broadcast %cst_9 : f32 to vector<2x4xf32>
      %c0_10 = arith.constant 0 : index
      %c0_11 = arith.constant 0 : index
      %12 = vector.load %arg6[%c0_10, %c0_11] : memref<2x4xf32, #tpu.memory_space<vmem>>, vector<2x4xf32>
      tpu.vector_store %arg6[%c0_10, %c0_11], %11 {strides = array<i32>} : memref<2x4xf32, #tpu.memory_space<vmem>>, vector<2x4xf32>,
    } else {
    }
    %c0 = arith.constant 0 : index
    %c0_1 = arith.constant 0 : index
    %c0_2 = arith.constant 0 : index
    %3 = vector.load %arg2[%c0, %c0_1, %c0_2] : memref<2x4x256xf32, #tpu.memory_space<vmem>>, vector<2x4x256xf32>
    %c0_3 = arith.constant 0 : index
    %c0_4 = arith.constant 0 : index
    %4 = vector.load %arg6[%c0_3, %c0_4] : memref<2x4xf32, #tpu.memory_space<vmem>>, vector<2x4xf32>
    %cst = arith.constant dense<0.000000e+00> : vector<2x4xf32>
    %5 = vector.multi_reduction <add>, %3, %cst [2] : vector<2x4x256xf32> to vector<2x4xf32>
    %6 = arith.addf %4, %5 : vector<2x4xf32>
    %c0_5 = arith.constant 0 : index
    %c0_6 = arith.constant 0 : index
    %7 = vector.load %arg6[%c0_5, %c0_6] : memref<2x4xf32, #tpu.memory_space<vmem>>, vector<2x4xf32>
    tpu.vector_store %arg6[%c0_5, %c0_6], %6 {strides = array<i32>} : memref<2x4xf32, #tpu.memory_space<vmem>>, vector<2x4xf32>,
    %c0_i32_7 = arith.constant 0 : i32
    %8 = arith.cmpi eq, %arg1, %c0_i32_7 : i32
    %9 = arith.extui %8 : i1 to i32
    %c0_i32_8 = arith.constant 0 : i32
    %10 = arith.cmpi ne, %9, %c0_i32_8 : i32
    scf.if %10 {
      %c0_9 = arith.constant 0 : index
      %c0_10 = arith.constant 0 : index
      %11 = vector.load %arg6[%c0_9, %c0_10] : memref<2x4xf32, #tpu.memory_space<vmem>>, vector<2x4xf32>
      %cst_11 = arith.constant 3.906250e-03 : f32
      %12 = vector.broadcast %cst_11 : f32 to vector<2x4xf32>
      %13 = arith.mulf %11, %12 : vector<2x4xf32>
      %c0_12 = arith.constant 0 : index
      %c0_13 = arith.constant 0 : index
      %14 = vector.load %arg3[%c0_12, %c0_13] : memref<4x128xf32, #tpu.memory_space<vmem>>, vector<4x128xf32>
      %cst_14 = arith.constant dense<0.000000e+00> : vector<2x128xf32>
      %15 = tpu.matmul %13, %14, %cst_14 {dimension_numbers = #tpu.dot_dimension_numbers<[1], [0], [0], [1], [0, 0, 1, 1], [], []>, precision = #tpu.contract_precision<fp32>} : vector<2x4xf32>, vector<4x128xf32>, vector<2x128xf32> -> vector<2x128xf32>
      %c0_15 = arith.constant 0 : index
      %c0_16 = arith.constant 0 : index
      %16 = vector.load %arg4[%c0_15, %c0_16] : memref<1x128xf32, #tpu.memory_space<vmem>>, vector<1x128xf32>
      %17 = vector.broadcast %16 : vector<1x128xf32> to vector<2x128xf32>
      %18 = arith.addf %15, %17 : vector<2x128xf32>
      %c0_17 = arith.constant 0 : index
      %c0_18 = arith.constant 0 : index
      %19 = vector.load %arg5[%c0_17, %c0_18] : memref<2x128xf32, #tpu.memory_space<vmem>>, vector<2x128xf32>
      tpu.vector_store %arg5[%c0_17, %c0_18], %18 {strides = array<i32>} : memref<2x128xf32, #tpu.memory_space<vmem>>, vector<2x128xf32>,
    } else {
    }
    return
  }
  func.func @transform_0(%arg0: i32, %arg1: i32) -> (i32, i32, i32) {
    %c0_i32 = arith.constant 0 : i32
    %c0_i32_0 = arith.constant 0 : i32
    return %arg0, %c0_i32, %arg1 : i32, i32, i32
  }
  func.func @transform_1(%arg0: i32, %arg1: i32) -> (i32, i32) {
    %c0_i32 = arith.constant 0 : i32
    %c0_i32_0 = arith.constant 0 : i32
    %c0_i32_1 = arith.constant 0 : i32
    return %c0_i32, %c0_i32_0 : i32, i32
  }
  func.func @transform_2(%arg0: i32, %arg1: i32) -> (i32, i32) {
    %c0_i32 = arith.constant 0 : i32
    %c0_i32_0 = arith.constant 0 : i32
    %c0_i32_1 = arith.constant 0 : i32
    return %c0_i32, %c0_i32_0 : i32, i32
  }
  func.func @transform_3(%arg0: i32, %arg1: i32) -> (i32, i32) {
    %c0_i32 = arith.constant 0 : i32
    %c0_i32_0 = arith.constant 0 : i32
    return %arg0, %c0_i32 : i32, i32
  }
}

</mosaic_0001>

<bundles_post_ra>
// kernel: tpu_custom_call.1
= control target key start
LH: loop header
LB: loop body
LE: loop exit
PB: predicated region body
PF: predicated region fallthrough
CT: control target
= control target key end

     0   :  { %8 = vsyncpa [#allocation4], 0  ;;  %s781_s0 = inlined_call_operand.hbm [shape: f32[2,4,256], index: 0, kind: input, shape index: {}]   ;;  %s782_s1 = inlined_call_operand.hbm [shape: f32[4,128], index: 1, kind: input, shape index: {}]   ;;  %s783_s2 = inlined_call_operand.vmem [shape: f32[1,128], index: 2, kind: input, shape index: {}]   ;;  %s784_s3 = inlined_call_operand.hbm [shape: f32[2,128], index: 3, kind: output, shape index: {}]  }
   0x1   :  { %9 = vsyncpa [#allocation7], 0 }
   0x2   :  { %10 = vsyncpa [#allocation5], 0  ;;  %s702_s12 = smov [#allocation3]   ;;  %s630_s16 = scalar_lea.hbm %s781_s0, 256 }
   0x3   :  { %s16_s13 = sshll.u32 %s702_s12, 4  ;;  %p631_p0 = scmp.ne.s32.totalorder %s781_s0, %s630_s16  ;;  %s17_s13 = int_to_ptr.vmem [resolvable:$true] %s16_s13 }
   0x4   :  { %p634_p1 = scmp.lt.u32.totalorder %s630_s16, %s781_s0 }
   0x6   :  { %p636_p2 = pnand %p634_p1, %p631_p0 }
   0x8   :  { %639 = shalt.err (!%p636_p2)
}
   0x9   :  { %s640_s21 = scalar_lea.vmem %s17_s13, 256  ;;  %p645_p4 = scmp.lt.s32.totalorder %s17_s13, %s17_s13 }
   0xa   :  { %p641_p3 = scmp.ne.s32.totalorder %s17_s13, %s640_s21  ;;  %p646_p5 = scmp.lt.s32.totalorder %s640_s21, %s640_s21 }
   0xc   :  { %p647_p6 = por %p646_p5, %p645_p4 }
   0xe   :  { %p648_p7 = pnand %p647_p6, %p641_p3 }
  0x10   :  { %651 = shalt.err (!%p648_p7)
}
  0x11   :  { %s703_s22 = smov 128   ;;  %s704_s23 = smov 8  }
  0x12   :  { %22 = dma.hbm_to_vmem [thread:$0]  %s781_s0, 256, %s17_s13, [#allocation4], %s703_s22, %s703_s22, %s704_s23  }
  0x13   :  { %s705_s26 = smov [#allocation6]   ;;  %s652_s30 = scalar_lea.hbm %s782_s1, 64 }
  0x14   :  { %s29_s27 = sshll.u32 %s705_s26, 4  ;;  %p653_p8 = scmp.ne.s32.totalorder %s782_s1, %s652_s30  ;;  %s30_s27 = int_to_ptr.vmem [resolvable:$true] %s29_s27 }
  0x15   :  { %p656_p9 = scmp.lt.u32.totalorder %s652_s30, %s782_s1 }
  0x17   :  { %p658_p10 = pnand %p656_p9, %p653_p8 }
  0x19   :  { %661 = shalt.err (!%p658_p10)
}
  0x1a   :  { %s662_s8 = scalar_lea.vmem %s30_s27, 64  ;;  %p667_p12 = scmp.lt.s32.totalorder %s30_s27, %s30_s27 }
  0x1b   :  { %p663_p11 = scmp.ne.s32.totalorder %s30_s27, %s662_s8  ;;  %p668_p13 = scmp.lt.s32.totalorder %s662_s8, %s662_s8 }
  0x1d   :  { %p669_p0 = por %p668_p13, %p667_p12 }
  0x1f   :  { %p670_p1 = pnand %p669_p0, %p663_p11 }
  0x21   :  { %673 = shalt.err (!%p670_p1)
}
  0x22   :  { %32 = dma.hbm_to_vmem [thread:$0]  %s782_s1, 64, %s30_s27, [#allocation7]  }
  0x23   :  { %696 = dma.done.wait [#allocation4], 256  }
  0x24   :  { %697 = vsyncadd [#allocation4], 4294967040 }
  0x25   :  { %698 = dma.done.wait [#allocation7], 64  }
  0x26   :  { %699 = vsyncadd [#allocation7], 4294967232  ;;  %vm56_vm0 = vcmask 1043456   ;;  %v47_v0 = vld [vmem:[#allocation3] sm:$0xff]  ;;  %v48_v1 = vld [vmem:[#allocation3 + $0x8] sm:$0xff]  ;;  %vm45_vm1 = vcmask 25600   ;;  %v69_v14 = vlaneseq }
  0x27   :  { %v52_v2 = vcombine.high %v47_v0, %v47_v0  ;;  %v57_v3 = vsel %vm56_vm0, %v47_v0, 0.0  ;;  %v53_v4 = vcombine.high %v48_v1, %v48_v1  ;;  %v62_v6 = vsel %vm56_vm0, %v48_v1, 0.0  ;;  %v90_v11 = vld [vmem:[#allocation6] sm:$0xf]  ;;  %v568_v39 = vld [vmem:[%s783_s2] ss:$0 sm:$0xff] }
  0x28   :  { %v706_v10 = vmov 0.0   ;;  %v103_v12 = vsel %vm56_vm0, %v90_v11, 0  ;;  %vm707_vm2 = vmmov 0   ;;  %v70_v15 = vand.u32 127, %v69_v14  ;;  %s708_s11 = smov [#allocation8]  }
  0x29   :  { %v58_v5 = vsel %vm56_vm0, %v52_v2, 0.0  ;;  %v63_v7 = vsel %vm56_vm0, %v53_v4, 0.0  ;;  %46 = vst.msk [vmem:[#allocation2] sm:$0x3] %vm45_vm1, %v706_v10  ;;  %596 = vmatprep.subr.mxu0 %v706_v10  ;;  %581 = vmatprep.subr.mxu1 %v706_v10  ;;  %v106_v13 = vand.u32 4294901760, %v103_v12  ;;  %v72_v16 = vshrl.u32 %v69_v14, 7 }
  0x2a   :  { %v59_v8 = vadd.f32 %v58_v5, %v57_v3  ;;  %v64_v9 = vadd.f32 %v63_v7, %v62_v6  ;;  %598 = vmatprep.mubr.msk.f32.mxu0 %vm707_vm2, %v706_v10  ;;  %583 = vmatprep.mubr.msk.f32.mxu1 %vm707_vm2, %v706_v10  ;;  %vm79_vm3 = vcmask 1041409   ;;  %vm98_vm4 = vcmask 31744   ;;  %s558_s12 = sshll.u32 %s708_s11, 4  ;;  %s559_s12 = int_to_ptr.vmem [resolvable:$true] %s558_s12 }
  0x2b   :  { %597 = vmatpush3.msra.mxu0 %v106_v13  ;;  %582 = vmatpush3.msra.mxu1 %v106_v13  ;;  %v73_v18 = vsub.s32 %v70_v15, %v72_v16  ;;  %v183_v25 = vsub.f32 %v103_v12, %v106_v13  ;;  %s674_s13 = scalar_lea.vmem %s559_s12, 32  ;;  %p679_p3 = scmp.lt.s32.totalorder %s559_s12, %s559_s12 }
  0x2c   :  { %60 = vadd.xlane.f32.xlu0 %v59_v8  ;;  %586 = vmatprep.subr.mxu1 %v706_v10  ;;  %p675_p2 = scmp.ne.s32.totalorder %s559_s12, %s674_s13  ;;  %p680_p4 = scmp.lt.s32.totalorder %s674_s13, %s674_s13 }
  0x2d   :  { %601 = vmatprep.subr.mxu0 %v706_v10  ;;  %v184_v29 = vand.u32 4294901760, %v183_v25 }
  0x2e   :  { %p681_p5 = por %p680_p4, %p679_p3 }
  0x2f   :  { %v185_v32 = vsub.f32 %v183_v25, %v184_v29 }
  0x30   :  { %65 = vadd.xlane.f32.xlu0 %v64_v9  ;;  %v49_v21 = vld [vmem:[#allocation2] sm:$0x3]  ;;  %p682_p6 = pnand %p681_p5, %p675_p2 }
  0x31   :  { %v186_v35 = vand.u32 4294901760, %v185_v32 }
  0xb9   :  { %v61_v17 = vpop.xlane.xlu0 %60 }
  0xba   :  { %v74_v20 = vrot.slane %v61_v17, %v73_v18 }
  0xbd   :  { %v66_v19 = vpop.xlane.xlu0 %65 }
  0xbe   :  { %v78_v22 = vrot.slane %v66_v19, %v73_v18 }
  0xc0   :  { %v80_v23 = vsel %vm79_vm3, %v78_v22, %v74_v20 }
  0xc1   :  { %v82_v24 = vadd.f32 %v80_v23, %v49_v21 }
  0xc3   :  { %84 = vst.msk [vmem:[#allocation2] sm:$0x3] %vm45_vm1, %v82_v24 }
  0xca   :  { %v88_v26 = vld [vmem:[#allocation2] sm:$0x3] }
  0xcb   :  { %v89_v27 = vmul.f32 0.00390625, %v88_v26 }
  0xcd   :  { %v100_v28 = vsel %vm98_vm4, %v89_v27, 0 }
  0xce   :  { %v171_v30 = vand.u32 4294901760, %v100_v28 }
  0xd0   :  { %v172_v31 = vsub.f32 %v100_v28, %v171_v30 }
  0xd2   :  { %v173_v33 = vand.u32 4294901760, %v172_v31 }
  0xd4   :  { %599 = vmatmul.mubr.f32.vlgmr.msra.gmra.mrb[0].mxu0 %v173_v33  ;;  %v174_v34 = vsub.f32 %v172_v31, %v173_v33 }
  0xd5   :  { %602 = vmatpush3.msra.mxu0 %v184_v29  ;;  %603 = vmatprep.mubr.msk.f32.mxu0 %vm707_vm2, %v706_v10 }
  0xd6   :  { %v175_v36 = vand.u32 4294901760, %v174_v34  ;;  %606 = vmatprep.subr.mxu0 %v706_v10 }
  0xd8   :  { %584 = vmatmul.mubr.f32.vlgmr.msra.gmra.mrb[0].mxu1 %v175_v36 }
  0xd9   :  { %587 = vmatpush3.msra.mxu1 %v186_v35  ;;  %588 = vmatprep.mubr.msk.f32.mxu1 %vm707_vm2, %v706_v10 }
  0xda   :  { %591 = vmatprep.subr.mxu1 %v706_v10 }
  0xdc   :  { %604 = vmatmul.mubr.f32.vlgmr.msra.gmra.mrb[0].mxu0 %v171_v30 }
  0xdd   :  { %607 = vmatpush3.msra.mxu0 %v106_v13  ;;  %608 = vmatprep.mubr.msk.f32.mxu0 %vm707_vm2, %v706_v10 }
  0xe0   :  { %589 = vmatmul.mubr.f32.vlgmr.msra.gmra.mrb[0].mxu1 %v171_v30 }
  0xe1   :  { %592 = vmatpush3.msra.mxu1 %v183_v25  ;;  %593 = vmatprep.mubr.msk.f32.mxu1 %vm707_vm2, %v706_v10 }
  0xe4   :  { %609 = vmatmul.mubr.f32.vlgmr.msra.gmra.mrb[0].mxu0 %v171_v30 }
  0xe8   :  { %594 = vmatmul.mubr.f32.vlgmr.msra.gmra.mrb[0].mxu1 %v172_v31 }
 0x1b7   :  { %v547_v37 = vpop.f32.mrb[0].mxu0 }
 0x1b8   :  { %v610_v38 = vpop.f32.mrb[1].mxu0 }
 0x1bb   :  { %v327_v40 = vpop.f32.mrb[0].mxu1 }
 0x1bc   :  { %v611_v41 = vadd.f32 %v568_v39, %v327_v40  ;;  %v595_v42 = vpop.f32.mrb[1].mxu1 }
 0x1be   :  { %v612_v43 = vadd.f32 %v611_v41, %v547_v37 }
 0x1c0   :  { %551 = vst [vmem:[#allocation8] sm:$0x3] %v612_v43 }
 0x1c1   :  { %685 = shalt.err (!%p682_p6)
}
 0x1c2   :  { %s686_s16 = scalar_lea.hbm %s784_s3, 32 }
 0x1c3   :  { %p687_p7 = scmp.ne.s32.totalorder %s784_s3, %s686_s16  ;;  %p690_p8 = scmp.lt.u32.totalorder %s686_s16, %s784_s3 }
 0x1c5   :  { %p692_p9 = pnand %p690_p8, %p687_p7 }
 0x1c7   :  { %695 = shalt.err (!%p692_p9)
}
 0x1c8   :  { %561 = dma.vmem_to_hbm [thread:$0]  %s559_s12, 32, %s784_s3, [#allocation5]  }
 0x1c9   :  { %700 = dma.done.wait [#allocation5], 32  }
 0x1ca   :  { %701 = vsyncadd [#allocation5], 4294967264 }
 0x1cb   :  { %565 = vsyncpa [#allocation4], 1 }
 0x1cc   :  { %566 = vsyncpa [#allocation7], 1 }
 0x1cd   :  { %567 = vsyncpa [#allocation5], 1 }

// kernel: tpu_custom_call.1
= control target key start
LH: loop header
LB: loop body
LE: loop exit
PB: predicated region body
PF: predicated region fallthrough
CT: control target
= control target key end

     0   :  { %8 = vsyncpa [#allocation4], 0  ;;  %s781_s0 = inlined_call_operand.hbm [shape: f32[2,4,256], index: 0, kind: input, shape index: {}]   ;;  %s782_s1 = inlined_call_operand.hbm [shape: f32[4,128], index: 1, kind: input, shape index: {}]   ;;  %s783_s2 = inlined_call_operand.vmem [shape: f32[1,128], index: 2, kind: input, shape index: {}]   ;;  %s784_s3 = inlined_call_operand.hbm [shape: f32[2,128], index: 3, kind: output, shape index: {}]  }
   0x1   :  { %9 = vsyncpa [#allocation7], 0 }
   0x2   :  { %10 = vsyncpa [#allocation5], 0  ;;  %s702_s12 = smov [#allocation3]   ;;  %s630_s16 = scalar_lea.hbm %s781_s0, 256 }
   0x3   :  { %s16_s13 = sshll.u32 %s702_s12, 4  ;;  %p631_p0 = scmp.ne.s32.totalorder %s781_s0, %s630_s16  ;;  %s17_s13 = int_to_ptr.vmem [resolvable:$true] %s16_s13 }
   0x4   :  { %p634_p1 = scmp.lt.u32.totalorder %s630_s16, %s781_s0 }
   0x6   :  { %p636_p2 = pnand %p634_p1, %p631_p0 }
   0x8   :  { %639 = shalt.err (!%p636_p2)
}
   0x9   :  { %s640_s21 = scalar_lea.vmem %s17_s13, 256  ;;  %p645_p4 = scmp.lt.s32.totalorder %s17_s13, %s17_s13 }
   0xa   :  { %p641_p3 = scmp.ne.s32.totalorder %s17_s13, %s640_s21  ;;  %p646_p5 = scmp.lt.s32.totalorder %s640_s21, %s640_s21 }
   0xc   :  { %p647_p6 = por %p646_p5, %p645_p4 }
   0xe   :  { %p648_p7 = pnand %p647_p6, %p641_p3 }
  0x10   :  { %651 = shalt.err (!%p648_p7)
}
  0x11   :  { %s703_s22 = smov 128   ;;  %s704_s23 = smov 8  }
  0x12   :  { %22 = dma.hbm_to_vmem [thread:$0]  %s781_s0, 256, %s17_s13, [#allocation4], %s703_s22, %s703_s22, %s704_s23  }
  0x13   :  { %s705_s26 = smov [#allocation6]   ;;  %s652_s30 = scalar_lea.hbm %s782_s1, 64 }
  0x14   :  { %s29_s27 = sshll.u32 %s705_s26, 4  ;;  %p653_p8 = scmp.ne.s32.totalorder %s782_s1, %s652_s30  ;;  %s30_s27 = int_to_ptr.vmem [resolvable:$true] %s29_s27 }
  0x15   :  { %p656_p9 = scmp.lt.u32.totalorder %s652_s30, %s782_s1 }
  0x17   :  { %p658_p10 = pnand %p656_p9, %p653_p8 }
  0x19   :  { %661 = shalt.err (!%p658_p10)
}
  0x1a   :  { %s662_s8 = scalar_lea.vmem %s30_s27, 64  ;;  %p667_p12 = scmp.lt.s32.totalorder %s30_s27, %s30_s27 }
  0x1b   :  { %p663_p11 = scmp.ne.s32.totalorder %s30_s27, %s662_s8  ;;  %p668_p13 = scmp.lt.s32.totalorder %s662_s8, %s662_s8 }
  0x1d   :  { %p669_p0 = por %p668_p13, %p667_p12 }
  0x1f   :  { %p670_p1 = pnand %p669_p0, %p663_p11 }
  0x21   :  { %673 = shalt.err (!%p670_p1)
}
  0x22   :  { %32 = dma.hbm_to_vmem [thread:$0]  %s782_s1, 64, %s30_s27, [#allocation7]  }
  0x23   :  { %696 = dma.done.wait [#allocation4], 256  }
  0x24   :  { %697 = vsyncadd [#allocation4], 4294967040 }
  0x25   :  { %698 = dma.done.wait [#allocation7], 64  }
  0x26   :  { %699 = vsyncadd [#allocation7], 4294967232  ;;  %vm56_vm0 = vcmask 1043456   ;;  %v47_v0 = vld [vmem:[#allocation3] sm:$0xff]  ;;  %v48_v1 = vld [vmem:[#allocation3 + $0x8] sm:$0xff]  ;;  %vm45_vm1 = vcmask 25600   ;;  %v69_v14 = vlaneseq }
  0x27   :  { %v52_v2 = vcombine.high %v47_v0, %v47_v0  ;;  %v57_v3 = vsel %vm56_vm0, %v47_v0, 0.0  ;;  %v53_v4 = vcombine.high %v48_v1, %v48_v1  ;;  %v62_v6 = vsel %vm56_vm0, %v48_v1, 0.0  ;;  %v90_v11 = vld [vmem:[#allocation6] sm:$0xf]  ;;  %v568_v39 = vld [vmem:[%s783_s2] ss:$0 sm:$0xff] }
  0x28   :  { %v706_v10 = vmov 0.0   ;;  %v103_v12 = vsel %vm56_vm0, %v90_v11, 0  ;;  %vm707_vm2 = vmmov 0   ;;  %v70_v15 = vand.u32 127, %v69_v14  ;;  %s708_s11 = smov [#allocation8]  }
  0x29   :  { %v58_v5 = vsel %vm56_vm0, %v52_v2, 0.0  ;;  %v63_v7 = vsel %vm56_vm0, %v53_v4, 0.0  ;;  %46 = vst.msk [vmem:[#allocation2] sm:$0x3] %vm45_vm1, %v706_v10  ;;  %596 = vmatprep.subr.mxu0 %v706_v10  ;;  %581 = vmatprep.subr.mxu1 %v706_v10  ;;  %v106_v13 = vand.u32 4294901760, %v103_v12  ;;  %v72_v16 = vshrl.u32 %v69_v14, 7 }
  0x2a   :  { %v59_v8 = vadd.f32 %v58_v5, %v57_v3  ;;  %v64_v9 = vadd.f32 %v63_v7, %v62_v6  ;;  %598 = vmatprep.mubr.msk.f32.mxu0 %vm707_vm2, %v706_v10  ;;  %583 = vmatprep.mubr.msk.f32.mxu1 %vm707_vm2, %v706_v10  ;;  %vm79_vm3 = vcmask 1041409   ;;  %vm98_vm4 = vcmask 31744   ;;  %s558_s12 = sshll.u32 %s708_s11, 4  ;;  %s559_s12 = int_to_ptr.vmem [resolvable:$true] %s558_s12 }
  0x2b   :  { %597 = vmatpush3.msra.mxu0 %v106_v13  ;;  %582 = vmatpush3.msra.mxu1 %v106_v13  ;;  %v73_v18 = vsub.s32 %v70_v15, %v72_v16  ;;  %v183_v25 = vsub.f32 %v103_v12, %v106_v13  ;;  %s674_s13 = scalar_lea.vmem %s559_s12, 32  ;;  %p679_p3 = scmp.lt.s32.totalorder %s559_s12, %s559_s12 }
  0x2c   :  { %60 = vadd.xlane.f32.xlu0 %v59_v8  ;;  %586 = vmatprep.subr.mxu1 %v706_v10  ;;  %p675_p2 = scmp.ne.s32.totalorder %s559_s12, %s674_s13  ;;  %p680_p4 = scmp.lt.s32.totalorder %s674_s13, %s674_s13 }
  0x2d   :  { %601 = vmatprep.subr.mxu0 %v706_v10  ;;  %v184_v29 = vand.u32 4294901760, %v183_v25 }
  0x2e   :  { %p681_p5 = por %p680_p4, %p679_p3 }
  0x2f   :  { %v185_v32 = vsub.f32 %v183_v25, %v184_v29 }
  0x30   :  { %65 = vadd.xlane.f32.xlu0 %v64_v9  ;;  %v49_v21 = vld [vmem:[#allocation2] sm:$0x3]  ;;  %p682_p6 = pnand %p681_p5, %p675_p2 }
  0x31   :  { %v186_v35 = vand.u32 4294901760, %v185_v32 }
  0xb9   :  { %v61_v17 = vpop.xlane.xlu0 %60 }
  0xba   :  { %v74_v20 = vrot.slane %v61_v17, %v73_v18 }
  0xbd   :  { %v66_v19 = vpop.xlane.xlu0 %65 }
  0xbe   :  { %v78_v22 = vrot.slane %v66_v19, %v73_v18 }
  0xc0   :  { %v80_v23 = vsel %vm79_vm3, %v78_v22, %v74_v20 }
  0xc1   :  { %v82_v24 = vadd.f32 %v80_v23, %v49_v21 }
  0xc3   :  { %84 = vst.msk [vmem:[#allocation2] sm:$0x3] %vm45_vm1, %v82_v24 }
  0xca   :  { %v88_v26 = vld [vmem:[#allocation2] sm:$0x3] }
  0xcb   :  { %v89_v27 = vmul.f32 0.00390625, %v88_v26 }
  0xcd   :  { %v100_v28 = vsel %vm98_vm4, %v89_v27, 0 }
  0xce   :  { %v171_v30 = vand.u32 4294901760, %v100_v28 }
  0xd0   :  { %v172_v31 = vsub.f32 %v100_v28, %v171_v30 }
  0xd2   :  { %v173_v33 = vand.u32 4294901760, %v172_v31 }
  0xd4   :  { %599 = vmatmul.mubr.f32.vlgmr.msra.gmra.mrb[0].mxu0 %v173_v33  ;;  %v174_v34 = vsub.f32 %v172_v31, %v173_v33 }
  0xd5   :  { %602 = vmatpush3.msra.mxu0 %v184_v29  ;;  %603 = vmatprep.mubr.msk.f32.mxu0 %vm707_vm2, %v706_v10 }
  0xd6   :  { %v175_v36 = vand.u32 4294901760, %v174_v34  ;;  %606 = vmatprep.subr.mxu0 %v706_v10 }
  0xd8   :  { %584 = vmatmul.mubr.f32.vlgmr.msra.gmra.mrb[0].mxu1 %v175_v36 }
  0xd9   :  { %587 = vmatpush3.msra.mxu1 %v186_v35  ;;  %588 = vmatprep.mubr.msk.f32.mxu1 %vm707_vm2, %v706_v10 }
  0xda   :  { %591 = vmatprep.subr.mxu1 %v706_v10 }
  0xdc   :  { %604 = vmatmul.mubr.f32.vlgmr.msra.gmra.mrb[0].mxu0 %v171_v30 }
  0xdd   :  { %607 = vmatpush3.msra.mxu0 %v106_v13  ;;  %608 = vmatprep.mubr.msk.f32.mxu0 %vm707_vm2, %v706_v10 }
  0xe0   :  { %589 = vmatmul.mubr.f32.vlgmr.msra.gmra.mrb[0].mxu1 %v171_v30 }
  0xe1   :  { %592 = vmatpush3.msra.mxu1 %v183_v25  ;;  %593 = vmatprep.mubr.msk.f32.mxu1 %vm707_vm2, %v706_v10 }
  0xe4   :  { %609 = vmatmul.mubr.f32.vlgmr.msra.gmra.mrb[0].mxu0 %v171_v30 }
  0xe8   :  { %594 = vmatmul.mubr.f32.vlgmr.msra.gmra.mrb[0].mxu1 %v172_v31 }
 0x1b7   :  { %v547_v37 = vpop.f32.mrb[0].mxu0 }
 0x1b8   :  { %v610_v38 = vpop.f32.mrb[1].mxu0 }
 0x1bb   :  { %v327_v40 = vpop.f32.mrb[0].mxu1 }
 0x1bc   :  { %v611_v41 = vadd.f32 %v568_v39, %v327_v40  ;;  %v595_v42 = vpop.f32.mrb[1].mxu1 }
 0x1be   :  { %v612_v43 = vadd.f32 %v611_v41, %v547_v37 }
 0x1c0   :  { %551 = vst [vmem:[#allocation8] sm:$0x3] %v612_v43 }
 0x1c1   :  { %685 = shalt.err (!%p682_p6)
}
 0x1c2   :  { %s686_s16 = scalar_lea.hbm %s784_s3, 32 }
 0x1c3   :  { %p687_p7 = scmp.ne.s32.totalorder %s784_s3, %s686_s16  ;;  %p690_p8 = scmp.lt.u32.totalorder %s686_s16, %s784_s3 }
 0x1c5   :  { %p692_p9 = pnand %p690_p8, %p687_p7 }
 0x1c7   :  { %695 = shalt.err (!%p692_p9)
}
 0x1c8   :  { %561 = dma.vmem_to_hbm [thread:$0]  %s559_s12, 32, %s784_s3, [#allocation5]  }
 0x1c9   :  { %700 = dma.done.wait [#allocation5], 32  }
 0x1ca   :  { %701 = vsyncadd [#allocation5], 4294967264 }
 0x1cb   :  { %565 = vsyncpa [#allocation4], 1 }
 0x1cc   :  { %566 = vsyncpa [#allocation7], 1 }
 0x1cd   :  { %567 = vsyncpa [#allocation5], 1 }

</bundles_post_ra>
